<compile_context>
chip_gen: v5e
topology: v5e:2x2
jax: 0.10.0
libtpu: 0.0.40
codegen_flags: <defaults>
</compile_context>

<pallas_src>
import math
from functools import partial

import jax
import jax.numpy as jnp
from jax import lax
from jax.experimental import pallas as pl
from jax.experimental.pallas import tpu as pltpu

# ----------------- toy config (fields mirror MixtralConfig) -------------------
HIDDEN = 64
N_HEADS = 4
N_KV_HEADS = 4                      # == N_HEADS -> repeat_kv is identity
HEAD_DIM = HIDDEN // N_HEADS
N_LAYERS = 2
FFN = HIDDEN * 4
N_EXPERTS = 4
TOP_K = 2                           # routing kernel is specialised for top-2
VOCAB = 256
RMS_EPS = 1e-5
ROPE_THETA = 500000.0

assert TOP_K == 2  # TODO(synk): generalise the in-kernel routing beyond top-2.


def _full_spec(shape):
    nd = len(shape)
    return pl.BlockSpec(shape, lambda i, _nd=nd: (0,) * _nd)


# =============================== Pallas kernels ===============================

def _ln_matmul_kernel(x_ref, g_ref, w_ref, o_ref, *, eps):
    """RMSNorm(x) @ W  (bf16 matmul inputs, f32 accumulation)."""
    x = x_ref[...].astype(jnp.float32)
    var = jnp.mean(x * x, axis=-1, keepdims=True)
    xn = (x * lax.rsqrt(var + eps)) * g_ref[...]
    o_ref[...] = jnp.dot(xn.astype(jnp.bfloat16), w_ref[...],
                         preferred_element_type=jnp.float32)


def ln_matmul(x2d, gamma, w, eps=RMS_EPS):
    T, H = x2d.shape
    N = w.shape[1]
    ce = pl.CostEstimate(flops=2 * T * H * N, transcendentals=T,
                         bytes_accessed=T * H * 4 + H * N * 2 + T * N * 4)
    return pl.pallas_call(
        partial(_ln_matmul_kernel, eps=eps),
        out_shape=jax.ShapeDtypeStruct((T, N), jnp.float32),
        grid=(1,),
        in_specs=[_full_spec((T, H)), _full_spec((1, H)), _full_spec((H, N))],
        out_specs=_full_spec((T, N)),
        cost_estimate=ce,
    )(x2d, gamma.reshape(1, H), w)


def _attn_kernel(q_ref, k_ref, v_ref, cos_ref, sin_ref, o_ref, *, scale):
    """RoPE + causal SDPA for all (batch*head) slices in one grid step.

    q/k/v: (BH, S, D) f32.  cos/sin: (1, S, D//2) f32 (half-width tables).
    f32 softmax with EUP approximate reciprocal; bf16 MXU matmuls.
    """
    cos = cos_ref[...]
    sin = sin_ref[...]
    d2 = cos.shape[-1]

    def rope(x):
        x1 = x[..., :d2]
        x2 = x[..., d2:]
        # == x * cat(cos,cos) + rotate_half(x) * cat(sin,sin)
        return jnp.concatenate([x1 * cos - x2 * sin, x2 * cos + x1 * sin], axis=-1)

    q = (rope(q_ref[...]) * scale).astype(jnp.bfloat16)
    k = rope(k_ref[...]).astype(jnp.bfloat16)
    v = v_ref[...].astype(jnp.bfloat16)

    s = jnp.einsum('bqd,bkd->bqk', q, k, preferred_element_type=jnp.float32)
    row = lax.broadcasted_iota(jnp.int32, s.shape, 1)
    col = lax.broadcasted_iota(jnp.int32, s.shape, 2)
    s = jnp.where(col <= row, s, -1e30)                     # causal mask
    m = jnp.max(s, axis=-1, keepdims=True)
    p = jnp.exp(s - m)
    denom = jnp.sum(p, axis=-1, keepdims=True)
    p = p * pl.reciprocal(denom, approx=True)
    o_ref[...] = jnp.einsum('bqk,bkd->bqd', p.astype(jnp.bfloat16), v,
                            preferred_element_type=jnp.float32)


def causal_attention_rope(q, k, v, cos, sin):
    """q, k, v: (B*H, S, D) -> (B*H, S, D) RoPE'd causal SDPA, all heads in one call."""
    BH, S, D = q.shape
    d2 = D // 2
    scale = 1.0 / math.sqrt(D)
    ce = pl.CostEstimate(flops=4 * BH * S * S * D, transcendentals=BH * S * S,
                         bytes_accessed=4 * BH * S * D * 4)
    return pl.pallas_call(
        partial(_attn_kernel, scale=scale),
        out_shape=jax.ShapeDtypeStruct((BH, S, D), jnp.float32),
        grid=(1,),
        in_specs=[_full_spec((BH, S, D))] * 3 + [_full_spec((1, S, d2))] * 2,
        out_specs=_full_spec((BH, S, D)),
        cost_estimate=ce,
    )(q, k, v, cos, sin)


def _post_attn_kernel(a_ref, wo_ref, r_ref, g_ref, wg_ref,
                      x_ref, h_ref, logits_ref, dw_ref, cnt_ref, *, eps):
    """Fused: o_proj + residual + post-attn RMSNorm + router gate + softmax +
    exact top-2 routing (first-index tie-break) + per-expert token counts."""
    # ---- output projection fused with residual add ----
    x = r_ref[...] + jnp.dot(a_ref[...].astype(jnp.bfloat16), wo_ref[...],
                             preferred_element_type=jnp.float32)
    x_ref[...] = x
    # ---- post-attention RMSNorm (bf16 activations for the experts) ----
    var = jnp.mean(x * x, axis=-1, keepdims=True)
    xn = (x * lax.rsqrt(var + eps)) * g_ref[...]
    xnb = xn.astype(jnp.bfloat16)
    h_ref[...] = xnb
    # ---- router gate ----
    logits = jnp.dot(xnb, wg_ref[...], preferred_element_type=jnp.float32)
    logits_ref[...] = logits
    # ---- softmax (common denominator cancels after top-k renormalisation) ----
    m = jnp.max(logits, axis=-1, keepdims=True)
    ex = jnp.exp(logits - m)
    probs = ex * pl.reciprocal(jnp.sum(ex, axis=-1, keepdims=True), approx=True)
    # ---- exact top-2 selection via max / masked-second-max ----
    E = probs.shape[-1]
    col = lax.broadcasted_iota(jnp.int32, probs.shape, 1)
    m1 = jnp.max(probs, axis=-1, keepdims=True)
    c1 = jnp.min(jnp.where(probs == m1, col, E), axis=-1, keepdims=True)
    sel1 = col == c1
    rem = jnp.where(sel1, -jnp.inf, probs)
    m2 = jnp.max(rem, axis=-1, keepdims=True)
    c2 = jnp.min(jnp.where(rem == m2, col, E), axis=-1, keepdims=True)
    sel2 = col == c2
    w = jnp.where(sel1, m1, 0.0) + jnp.where(sel2, m2, 0.0)
    dw_ref[...] = w / (m1 + m2)                              # renormalised top-2 weights
    cnt_ref[...] = jnp.sum((sel1 | sel2).astype(jnp.int32), axis=0, keepdims=True)


def post_attention(attn2d, wo, resid2d, gamma, wg, eps=RMS_EPS):
    T, H = attn2d.shape
    E = wg.shape[1]
    out_shape = (
        jax.ShapeDtypeStruct((T, H), jnp.float32),   # x2d (residual for MoE)
        jax.ShapeDtypeStruct((T, H), jnp.bfloat16),  # normalized activations
        jax.ShapeDtypeStruct((T, E), jnp.float32),   # router logits
        jax.ShapeDtypeStruct((T, E), jnp.float32),   # dense top-2 routing weights
        jax.ShapeDtypeStruct((1, E), jnp.int32),     # per-expert token counts
    )
    return pl.pallas_call(
        partial(_post_attn_kernel, eps=eps),
        out_shape=out_shape,
        grid=(1,),
        in_specs=[_full_spec((T, H)), _full_spec((H, H)), _full_spec((T, H)),
                  _full_spec((1, H)), _full_spec((H, E))],
        out_specs=(_full_spec((T, H)), _full_spec((T, H)), _full_spec((T, E)),
                   _full_spec((T, E)), _full_spec((1, E))),
    )(attn2d, wo, resid2d, gamma.reshape(1, H), wg)


def _moe_kernel(cnt_ref, x_ref, dw_ref, r_ref, w1_ref, w3_ref, w2_ref, o_ref, acc_ref):
    e = pl.program_id(0)

    @pl.when(e == 0)
    def _():
        acc_ref[...] = jnp.zeros_like(acc_ref)

    # Skip compute for experts that were not selected by any token.
    # TODO(synk): also skip the expert-weight DMA via scalar-prefetched group
    # offsets in the index_map (token grouping by expert) when scaling up.
    @pl.when(cnt_ref[0, e] > 0)
    def _():
        x = x_ref[...]                                                    # (T, H) bf16
        h1 = jnp.dot(x, w1_ref[0], preferred_element_type=jnp.float32)    # (T, F)
        h3 = jnp.dot(x, w3_ref[0], preferred_element_type=jnp.float32)    # (T, F)
        h = (h1 * jax.nn.sigmoid(h1)) * h3                                # SiLU(w1 x) * w3 x
        out = jnp.dot(h.astype(jnp.bfloat16), w2_ref[0],
                      preferred_element_type=jnp.float32)                 # (T, H)
        # select routing-weight column e with a masked lane-reduce (no XLA transpose)
        dw = dw_ref[...]                                                  # (T, E) f32
        col = lax.broadcasted_iota(jnp.int32, dw.shape, 1)
        rw = jnp.sum(jnp.where(col == e, dw, 0.0), axis=-1, keepdims=True)  # (T, 1)
        acc_ref[...] += out * rw

    @pl.when(e == pl.num_programs(0) - 1)
    def _():
        o_ref[...] = r_ref[...] + acc_ref[...]           # residual add, single store


def moe_experts(counts, h_bf16, dense_w, resid2d, w1, w3, w2):
    """Dense-weight formulation of block-sparse top-k MoE with f32 scratch
    accumulation; experts with no routed tokens are compute-skipped."""
    T, H = h_bf16.shape
    E, _, F = w1.shape
    ce = pl.CostEstimate(flops=6 * E * T * H * F, transcendentals=E * T * F,
                         bytes_accessed=3 * E * H * F * 2 + 3 * T * H * 4)
    grid_spec = pltpu.PrefetchScalarGridSpec(
        num_scalar_prefetch=1,
        grid=(E,),
        in_specs=[pl.BlockSpec((T, H), lambda e, cnt: (0, 0)),
                  pl.BlockSpec((T, E), lambda e, cnt: (0, 0)),
                  pl.BlockSpec((T, H), lambda e, cnt: (0, 0)),
                  pl.BlockSpec((1, H, F), lambda e, cnt: (e, 0, 0)),
                  pl.BlockSpec((1, H, F), lambda e, cnt: (e, 0, 0)),
                  pl.BlockSpec((1, F, H), lambda e, cnt: (e, 0, 0))],
        out_specs=pl.BlockSpec((T, H), lambda e, cnt: (0, 0)),
        scratch_shapes=[pltpu.VMEM((T, H), jnp.float32)],
    )
    return pl.pallas_call(
        _moe_kernel,
        out_shape=jax.ShapeDtypeStruct((T, H), jnp.float32),
        grid_spec=grid_spec,
        compiler_params=pltpu.CompilerParams(dimension_semantics=("arbitrary",)),
        cost_estimate=ce,
    )(counts, h_bf16, dense_w, resid2d, w1, w3, w2)


def _rmsnorm_kernel(x_ref, g_ref, o_ref, *, eps):
    x = x_ref[...].astype(jnp.float32)
    var = jnp.mean(x * x, axis=-1, keepdims=True)
    o_ref[...] = (g_ref[...] * (x * lax.rsqrt(var + eps))).astype(o_ref.dtype)


def rmsnorm(x2d, gamma, eps=RMS_EPS):
    T, H = x2d.shape
    return pl.pallas_call(
        partial(_rmsnorm_kernel, eps=eps),
        out_shape=jax.ShapeDtypeStruct((T, H), x2d.dtype),
        grid=(1,),
        in_specs=[_full_spec((T, H)), _full_spec((1, H))],
        out_specs=_full_spec((T, H)),
    )(x2d, gamma.reshape(1, H))


# ================================ JAX glue ====================================

def rope_cache(seq_len, dim, theta):
    """Half-width cos/sin tables (S, dim//2); the full-width table is cat(f, f)."""
    inv_freq = 1.0 / (theta ** (jnp.arange(0, dim, 2, dtype=jnp.float32) / dim))
    t = jnp.arange(seq_len, dtype=jnp.float32)
    freqs = jnp.outer(t, inv_freq)                       # (S, dim//2)
    return jnp.cos(freqs)[None], jnp.sin(freqs)[None]    # (1, S, dim//2)


def decoder_layer(x, p, cos, sin):
    B, S, H = x.shape
    T = B * S
    x2d = x.reshape(T, H)
    # fused RMSNorm + (q|k|v) projection into one lane-dense (T, 3H) matmul
    qkv = ln_matmul(x2d, p["input_ln"], p["wqkv"]).reshape(B, S, 3, N_HEADS, HEAD_DIM)

    # num_key_value_groups == 1 -> repeat_kv is identity.
    # TODO(synk): fold the (B,S,nH,D)<->(B*nH,S,D) shuffles into attention BlockSpecs.
    def to_heads(t):
        return t.transpose(0, 2, 1, 3).reshape(B * N_HEADS, S, HEAD_DIM)

    o = causal_attention_rope(to_heads(qkv[:, :, 0]), to_heads(qkv[:, :, 1]),
                              to_heads(qkv[:, :, 2]), cos, sin)       # (B*nH, S, D)
    attn2d = o.reshape(B, N_HEADS, S, HEAD_DIM).transpose(0, 2, 1, 3).reshape(T, H)

    # fused o_proj + residual + post-LN + gate + softmax + top-2 routing + counts
    resid2d, h_bf16, router_logits, dense_w, counts = post_attention(
        attn2d, p["wo"], x2d, p["post_ln"], p["wgate"])
    out2d = moe_experts(counts, h_bf16, dense_w, resid2d, p["w1"], p["w3"], p["w2"])
    return out2d.reshape(B, S, H), router_logits


def mixtral_forward(params, input_ids):
    B, S = input_ids.shape
    x = params["embed"][input_ids]                                   # embedding gather (glue)
    cos, sin = rope_cache(S, HEAD_DIM, ROPE_THETA)
    all_router_logits = ()
    for p in params["layers"]:
        x, rl = decoder_layer(x, p, cos, sin)
        all_router_logits += (rl,)
    x2d = rmsnorm(x.reshape(-1, HIDDEN), params["final_ln"])
    return x2d.reshape(B, S, HIDDEN), all_router_logits


# ============================ deterministic init ==============================

def init_params(key):
    keys = jax.random.split(key, 2 + N_LAYERS)
    params = {
        "embed": jax.random.normal(keys[0], (VOCAB, HIDDEN), jnp.float32) * 0.02,
        "final_ln": jnp.ones((HIDDEN,), jnp.float32),
        "layers": [],
    }
    for l in range(N_LAYERS):
        k = jax.random.split(keys[2 + l], 8)
        # Weights are created in PyTorch (out, in) layout and packed ONCE here:
        #   transposed to (in, out), q/k/v fused along the output dim, cast to bf16.
        wq = jax.random.normal(k[0], (N_HEADS * HEAD_DIM, HIDDEN), jnp.float32) * 0.02
        wk = jax.random.normal(k[1], (N_KV_HEADS * HEAD_DIM, HIDDEN), jnp.float32) * 0.02
        wv = jax.random.normal(k[2], (N_KV_HEADS * HEAD_DIM, HIDDEN), jnp.float32) * 0.02
        wo = jax.random.normal(k[3], (HIDDEN, N_HEADS * HEAD_DIM), jnp.float32) * 0.02
        gate = jax.random.normal(k[4], (N_EXPERTS, HIDDEN), jnp.float32) * 0.02
        w1 = jax.random.normal(k[5], (N_EXPERTS, FFN, HIDDEN), jnp.float32) * 0.02
        w2 = jax.random.normal(k[6], (N_EXPERTS, HIDDEN, FFN), jnp.float32) * 0.02
        w3 = jax.random.normal(k[7], (N_EXPERTS, FFN, HIDDEN), jnp.float32) * 0.02
        p = {
            "input_ln": jnp.ones((HIDDEN,), jnp.float32),
            "post_ln": jnp.ones((HIDDEN,), jnp.float32),
            "wqkv": jnp.concatenate([wq.T, wk.T, wv.T], axis=1).astype(jnp.bfloat16),  # (H, 3H)
            "wo": wo.T.astype(jnp.bfloat16),                                           # (H, H)
            "wgate": gate.T.astype(jnp.bfloat16),                                      # (H, E)
            "w1": jnp.transpose(w1, (0, 2, 1)).astype(jnp.bfloat16),                   # (E, H, F)
            "w3": jnp.transpose(w3, (0, 2, 1)).astype(jnp.bfloat16),                   # (E, H, F)
            "w2": jnp.transpose(w2, (0, 2, 1)).astype(jnp.bfloat16),                   # (E, F, H)
        }
        params["layers"].append(p)
    return params


if __name__ == "__main__":
    key = jax.random.PRNGKey(0)
    pkey, dkey = jax.random.split(key)
    params = init_params(pkey)

    B, S = 2, 8
    input_ids = jax.random.randint(dkey, (B, S), 0, VOCAB)

    hidden_states, all_router_logits = mixtral_forward(params, input_ids)
    hidden_states = jax.block_until_ready(hidden_states)
    for rl in all_router_logits:
        jax.block_until_ready(rl)

    assert hidden_states.shape == (B, S, HIDDEN)
    assert len(all_router_logits) == N_LAYERS
    assert all_router_logits[0].shape == (B * S, N_EXPERTS)
    print("KERNEL_OK")
</pallas_src>

<mosaic_0001>
module attributes {stable_mosaic.version = 11 : i64} {
  func.func @_ln_matmul_kernel(%arg0: i32, %arg1: memref<16x64xf32, #tpu.memory_space<vmem>>, %arg2: memref<1x64xf32, #tpu.memory_space<vmem>>, %arg3: memref<64x192xbf16, #tpu.memory_space<vmem>>, %arg4: memref<16x192xf32, #tpu.memory_space<vmem>>) attributes {dimension_semantics = [#tpu.dimension_semantics<arbitrary>], iteration_bounds = array<i64: 1>, scalar_prefetch = 0 : i64, scratch_operands = 0 : i64, tpu.core_type = #tpu.core_type<tc>, window_params = [{pipeline_mode = #tpu.pipeline_mode<synchronous>, transform_indices = @transform_0, window_bounds = array<i64: 16, 64>}, {pipeline_mode = #tpu.pipeline_mode<synchronous>, transform_indices = @transform_1, window_bounds = array<i64: 1, 64>}, {pipeline_mode = #tpu.pipeline_mode<synchronous>, transform_indices = @transform_2, window_bounds = array<i64: 64, 192>}, {pipeline_mode = #tpu.pipeline_mode<synchronous>, transform_indices = @transform_3, window_bounds = array<i64: 16, 192>}]} {
    %c0 = arith.constant 0 : index
    %c0_0 = arith.constant 0 : index
    %0 = vector.load %arg1[%c0, %c0_0] : memref<16x64xf32, #tpu.memory_space<vmem>>, vector<16x64xf32>
    %1 = arith.mulf %0, %0 : vector<16x64xf32>
    %cst = arith.constant dense<0.000000e+00> : vector<16xf32>
    %2 = vector.multi_reduction <add>, %1, %cst [1] : vector<16x64xf32> to vector<16xf32>
    %3 = vector.shape_cast %2 : vector<16xf32> to vector<16x1xf32>
    %cst_1 = arith.constant 6.400000e+01 : f32
    %4 = vector.broadcast %cst_1 : f32 to vector<16x1xf32>
    %5 = arith.divf %3, %4 : vector<16x1xf32>
    %cst_2 = arith.constant 9.99999974E-6 : f32
    %6 = vector.broadcast %cst_2 : f32 to vector<16x1xf32>
    %7 = arith.addf %5, %6 : vector<16x1xf32>
    %8 = math.rsqrt %7 : vector<16x1xf32>
    %9 = vector.broadcast %8 : vector<16x1xf32> to vector<16x64xf32>
    %10 = arith.mulf %0, %9 : vector<16x64xf32>
    %c0_3 = arith.constant 0 : index
    %c0_4 = arith.constant 0 : index
    %11 = vector.load %arg2[%c0_3, %c0_4] : memref<1x64xf32, #tpu.memory_space<vmem>>, vector<1x64xf32>
    %12 = vector.broadcast %11 : vector<1x64xf32> to vector<16x64xf32>
    %13 = arith.mulf %10, %12 : vector<16x64xf32>
    %14 = arith.truncf %13 : vector<16x64xf32> to vector<16x64xbf16>
    %c0_5 = arith.constant 0 : index
    %c0_6 = arith.constant 0 : index
    %15 = vector.load %arg3[%c0_5, %c0_6] : memref<64x192xbf16, #tpu.memory_space<vmem>>, vector<64x192xbf16>
    %cst_7 = arith.constant dense<0.000000e+00> : vector<16x192xf32>
    %16 = tpu.matmul %14, %15, %cst_7 {dimension_numbers = #tpu.dot_dimension_numbers<[1], [0], [0], [1], [0, 0, 1, 1], [], []>} : vector<16x64xbf16>, vector<64x192xbf16>, vector<16x192xf32> -> vector<16x192xf32>
    %c0_8 = arith.constant 0 : index
    %c0_9 = arith.constant 0 : index
    %17 = vector.load %arg4[%c0_8, %c0_9] : memref<16x192xf32, #tpu.memory_space<vmem>>, vector<16x192xf32>
    tpu.vector_store %arg4[%c0_8, %c0_9], %16 {strides = array<i32>} : memref<16x192xf32, #tpu.memory_space<vmem>>, vector<16x192xf32>,
    return
  }
  func.func @transform_0(%arg0: i32) -> (i32, i32) {
    %c0_i32 = arith.constant 0 : i32
    %c0_i32_0 = arith.constant 0 : i32
    %c0_i32_1 = arith.constant 0 : i32
    return %c0_i32, %c0_i32_0 : i32, i32
  }
  func.func @transform_1(%arg0: i32) -> (i32, i32) {
    %c0_i32 = arith.constant 0 : i32
    %c0_i32_0 = arith.constant 0 : i32
    %c0_i32_1 = arith.constant 0 : i32
    return %c0_i32, %c0_i32_0 : i32, i32
  }
  func.func @transform_2(%arg0: i32) -> (i32, i32) {
    %c0_i32 = arith.constant 0 : i32
    %c0_i32_0 = arith.constant 0 : i32
    %c0_i32_1 = arith.constant 0 : i32
    return %c0_i32, %c0_i32_0 : i32, i32
  }
  func.func @transform_3(%arg0: i32) -> (i32, i32) {
    %c0_i32 = arith.constant 0 : i32
    %c0_i32_0 = arith.constant 0 : i32
    %c0_i32_1 = arith.constant 0 : i32
    return %c0_i32, %c0_i32_0 : i32, i32
  }
}

</mosaic_0001>

<bundles_post_ra>
// kernel: tpu_custom_call.1
= control target key start
LH: loop header
LB: loop body
LE: loop exit
PB: predicated region body
PF: predicated region fallthrough
CT: control target
= control target key end

     0   :  { %8 = vsyncpa [#allocation3], 0  ;;  %s432_s0 = inlined_call_operand.hbm [shape: f32[16,64], index: 0, kind: input, shape index: {}]   ;;  %s433_s1 = inlined_call_operand.hbm [shape: f32[1,64], index: 1, kind: input, shape index: {}]   ;;  %s434_s2 = inlined_call_operand.hbm [shape: bf16[64,192], index: 2, kind: input, shape index: {}]   ;;  %s435_s3 = inlined_call_operand.hbm [shape: f32[16,192], index: 3, kind: output, shape index: {}]  }
   0x1   :  { %9 = vsyncpa [#allocation6], 0  ;;  %s29_s14 = sshll.u32 %s433_s1, 4  ;;  %s30_s14 = int_to_ptr.hbm [resolvable:$true] %s29_s14 }
   0x2   :  { %10 = vsyncpa [#allocation4], 0  ;;  %s375_s15 = smov [#allocation5]   ;;  %s15_s19 = sshll.u32 %s432_s0, 4  ;;  %s16_s19 = int_to_ptr.hbm [resolvable:$true] %s15_s19 }
   0x3   :  { %s31_s16 = sshll.u32 %s375_s15, 4  ;;  %s376_s20 = smov [#allocation2]   ;;  %s32_s16 = int_to_ptr.vmem [resolvable:$true] %s31_s16 }
   0x4   :  { %34 = dma.hbm_to_vmem [thread:$0]  %s30_s14, 16, %s32_s16, [#allocation6]  }
   0x5   :  { %s17_s21 = sshll.u32 %s376_s20, 4  ;;  %s377_s22 = smov 128   ;;  %s18_s21 = int_to_ptr.vmem [resolvable:$true] %s17_s21 }
   0x6   :  { %s378_s23 = smov 8   ;;  %s39_s1 = sshll.u32 %s434_s2, 4  ;;  %s40_s1 = int_to_ptr.hbm [resolvable:$true] %s39_s1 }
   0x7   :  { %23 = dma.hbm_to_vmem [thread:$0]  %s16_s19, 256, %s18_s21, [#allocation3], %s377_s22, %s377_s22, %s378_s23  }
   0x8   :  { %s379_s26 = smov [#allocation7]  }
   0x9   :  { %s41_s27 = sshll.u32 %s379_s26, 4  ;;  %s42_s27 = int_to_ptr.vmem [resolvable:$true] %s41_s27 }
   0xa   :  { %47 = dma.hbm_to_vmem [thread:$0]  %s40_s1, 1024, %s42_s27, [#allocation6], %s377_s22, %s377_s22, %s378_s23  }
   0xb   :  { %369 = dma.done.wait [#allocation3], 256  }
   0xc   :  { %370 = vsyncadd [#allocation3], 4294967040 }
   0xd   :  { %371 = dma.done.wait [#allocation6], 1040  }
   0xe   :  { %372 = vsyncadd [#allocation6], 4294966256  ;;  %v413_v0 = vld [vmem:[#allocation2] sm:$0xff]  ;;  %vm65_vm0 = vcmask 523264   ;;  %v417_v2 = vld [vmem:[#allocation2 + $0x8] sm:$0xff]  ;;  %v380_v6 = vmov 64.0  }
   0xf   :  { %v63_v1 = vmul.f32 %v413_v0, %v413_v0  ;;  %v64_v4 = vmul.f32 %v417_v2, %v417_v2  ;;  %267 = vrcp.f32 %v380_v6  ;;  %v241_v10 = vld [vmem:[#allocation7 + $0x30] sm:$0xf]  ;;  %v256_v11 = vld [vmem:[#allocation7 + $0x34] sm:$0xf0]  ;;  %v255_v12 = vld [vmem:[#allocation7 + $0x34] sm:$0xf] }
  0x10   :  { %v242_v13 = vor.u32 %v256_v11, %v241_v10  ;;  %v243_v14 = vld [vmem:[#allocation7 + $0x38] sm:$0xf0]  ;;  %v233_v17 = vld [vmem:[#allocation7 + $0x20] sm:$0xf]  ;;  %v254_v18 = vld [vmem:[#allocation7 + $0x24] sm:$0xf0] }
  0x11   :  { %v66_v3 = vsel %vm65_vm0, %v63_v1, 0.0  ;;  %v69_v5 = vsel %vm65_vm0, %v64_v4, 0.0  ;;  %v246_v15 = vor.u32 %v255_v12, %v243_v14  ;;  %v253_v19 = vld [vmem:[#allocation7 + $0x24] sm:$0xf]  ;;  %v234_v20 = vor.u32 %v254_v18, %v233_v17  ;;  %v235_v21 = vld [vmem:[#allocation7 + $0x28] sm:$0xf0] }
  0x12   :  { %67 = vadd.xlane.f32.xlu0 %v66_v3  ;;  %167 = vmatpush.bf16.msra.mxu0 %v242_v13  ;;  %v238_v22 = vor.u32 %v253_v19, %v235_v21  ;;  %v225_v24 = vld [vmem:[#allocation7 + $0x10] sm:$0xf]  ;;  %v252_v25 = vld [vmem:[#allocation7 + $0x14] sm:$0xf0]  ;;  %v251_v26 = vld [vmem:[#allocation7 + $0x14] sm:$0xf] }
  0x13   :  { %181 = vmatpush.bf16.msra.mxu1 %v246_v15  ;;  %v226_v27 = vor.u32 %v252_v25, %v225_v24  ;;  %v227_v28 = vld [vmem:[#allocation7 + $0x18] sm:$0xf0]  ;;  %v217_v31 = vld [vmem:[#allocation7] sm:$0xf]  ;;  %v250_v32 = vld [vmem:[#allocation7 + $0x4] sm:$0xf0] }
  0x14   :  { %v230_v29 = vor.u32 %v251_v26, %v227_v28  ;;  %v249_v33 = vld [vmem:[#allocation7 + $0x4] sm:$0xf]  ;;  %v218_v34 = vor.u32 %v250_v32, %v217_v31  ;;  %v219_v35 = vld [vmem:[#allocation7 + $0x8] sm:$0xf0]  ;;  %v266_v57 = vld [vmem:[#allocation5] ss:$0 sm:$0xff] }
  0x15   :  { %v268_v7 = vpop.eup %267  ;;  %v222_v37 = vor.u32 %v249_v33, %v219_v35  ;;  %s381_s0 = smov [#allocation8]   ;;  %s201_s30 = sshll.u32 %s435_s3, 4  ;;  %s202_s30 = int_to_ptr.hbm [resolvable:$true] %s201_s30 }
  0x16   :  { %v73_v8 = vmul.f32 64.0, %v268_v7  ;;  %168 = vmatpush.bf16.msra.mxu0 %v234_v20  ;;  %vm77_vm1 = vweird.f32 %v268_v7  ;;  %s199_s2 = sshll.u32 %s381_s0, 4  ;;  %s382_s4 = smov 256   ;;  %s200_s2 = int_to_ptr.vmem [resolvable:$true] %s199_s2 }
  0x17   :  { %182 = vmatpush.bf16.msra.mxu1 %v238_v22  ;;  %s383_s5 = smov 16  }
  0x18   :  { %v74_v9 = vsub.f32 1.0, %v73_v8 }
  0x1a   :  { %70 = vadd.xlane.f32.xlu0 %v69_v5  ;;  %v75_v16 = vmul.f32 %v268_v7, %v74_v9  ;;  %169 = vmatpush.bf16.msra.mxu0 %v226_v27 }
  0x1b   :  { %183 = vmatpush.bf16.msra.mxu1 %v230_v29 }
  0x1c   :  { %v76_v23 = vadd.f32 %v268_v7, %v75_v16 }
  0x1e   :  { %v78_v30 = vsel %vm77_vm1, %v268_v7, %v76_v23  ;;  %170 = vmatpush.bf16.msra.mxu0 %v218_v34 }
  0x1f   :  { %184 = vmatpush.bf16.msra.mxu1 %v222_v37 }
  0x85   :  { %v68_v36 = vpop.xlane.xlu0 %67 }
  0x86   :  { %v79_v38 = vmul.f32 %v78_v30, %v68_v36 }
  0x88   :  { %v81_v39 = vadd.f32 1e-05, %v79_v38 }
  0x8a   :  { %269 = vrsqrt.f32 %v81_v39  ;;  %vm89_vm3 = vweird.f32 %v81_v39 }
  0x8d   :  { %v71_v40 = vpop.xlane.xlu0 %70 }
  0x8e   :  { %v80_v41 = vmul.f32 %v78_v30, %v71_v40 }
  0x90   :  { %v270_v42 = vpop.eup %269  ;;  %v82_v43 = vadd.f32 1e-05, %v80_v41 }
  0x91   :  { %v84_v44 = vmul.f32 %v270_v42, %v81_v39  ;;  %vm90_vm2 = vweird.f32 %v270_v42 }
  0x92   :  { %271 = vrsqrt.f32 %v82_v43  ;;  %vm91_vm4 = vmor %vm89_vm3, %vm90_vm2  ;;  %vm99_vm6 = vweird.f32 %v82_v43 }
  0x93   :  { %v85_v45 = vmul.f32 %v270_v42, %v84_v44 }
  0x95   :  { %v86_v46 = vmul.f32 0.5, %v85_v45 }
  0x97   :  { %v87_v47 = vsub.f32 1.5, %v86_v46 }
  0x98   :  { %v272_v48 = vpop.eup %271 }
  0x99   :  { %v94_v49 = vmul.f32 %v272_v48, %v82_v43  ;;  %v88_v50 = vmul.f32 %v270_v42, %v87_v47  ;;  %vm100_vm5 = vweird.f32 %v272_v48 }
  0x9a   :  { %vm101_vm7 = vmor %vm99_vm6, %vm100_vm5 }
  0x9b   :  { %v95_v51 = vmul.f32 %v272_v48, %v94_v49  ;;  %v92_v53 = vsel %vm91_vm4, %v270_v42, %v88_v50 }
  0x9c   :  { %v103_v56 = vmul.f32 %v92_v53, %v413_v0 }
  0x9d   :  { %v96_v52 = vmul.f32 0.5, %v95_v51 }
  0x9e   :  { %v109_v60 = vmul.f32 %v266_v57, %v103_v56 }
  0x9f   :  { %v97_v54 = vsub.f32 1.5, %v96_v52 }
  0xa1   :  { %v98_v55 = vmul.f32 %v272_v48, %v97_v54 }
  0xa3   :  { %v102_v58 = vsel %vm101_vm7, %v272_v48, %v98_v55 }
  0xa4   :  { %v104_v59 = vmul.f32 %v102_v58, %v417_v2 }
  0xa6   :  { %v110_v61 = vmul.f32 %v266_v57, %v104_v59 }
  0xa8   :  { %v111_v62 = vpack.c.bf16 %v110_v61, %v109_v60 }
  0xaa   :  { %247 = vmatmul.msk.bf16.vlgmr.msra.gmra.mxu0 %vm65_vm0, %v111_v62  ;;  %248 = vmatmul.msk.bf16.vlgmr.msra.gmra.mxu1 %vm65_vm0, %v111_v62 }
 0x127   :  { %v172_v63 = vpop.f32.mrf.mxu0  ;;  %v186_v1 = vpop.f32.mrf.mxu1 }
 0x128   :  { %191 = vst [vmem:[#allocation8] sm:$0xff] %v172_v63 }
 0x129   :  { %192 = vst.msk [vmem:[#allocation8 + $0x8] sm:$0xff] %vm65_vm0, %v186_v1 }
 0x12f   :  { %v174_v0 = vpop.f32.mrf.mxu0  ;;  %v188_v2 = vpop.f32.mrf.mxu1 }
 0x130   :  { %193 = vst [vmem:[#allocation8 + $0x10] sm:$0xff] %v174_v0 }
 0x131   :  { %194 = vst.msk [vmem:[#allocation8 + $0x18] sm:$0xff] %vm65_vm0, %v188_v2 }
 0x132   :  { %207 = dma.vmem_to_hbm [thread:$0]  %s200_s2, 512, %s202_s30, [#allocation4], %s382_s4, %s382_s4, %s383_s5  }
 0x133   :  { %373 = dma.done.wait [#allocation4], 512  }
 0x134   :  { %374 = vsyncadd [#allocation4], 4294966784 }
 0x135   :  { %212 = vsyncpa [#allocation3], 1 }
 0x136   :  { %213 = vsyncpa [#allocation6], 1 }
 0x137   :  { %214 = vsyncpa [#allocation4], 1 }

</bundles_post_ra>
